<compile_context>
chip_gen: v6e
topology: v6e:2x2x1
jax: 0.10.0
libtpu: 0.0.40
codegen_flags: <defaults>
</compile_context>

<pallas_src>
import functools

import jax
import jax.numpy as jnp
from jax.experimental import pallas as pl
from jax.experimental.pallas import tpu as pltpu


def _round_up(v, m):
    return ((v + m - 1) // m) * m


def _tpu_vmem_and_cores():
    """Return (per-core VMEM bytes, TensorCores per chip) with a safe fallback."""
    vmem = 64 << 20
    try:
        info = pltpu.get_tpu_info()
        vmem = int(getattr(info, "vmem_capacity_bytes", vmem))
    except Exception:
        pass
    # 64 MiB per-TC VMEM -> v7x-class (2 TCs/chip); 128 MiB -> v5e/v6e (1 TC).
    num_cores = 2 if vmem <= (64 << 20) else 1
    return vmem, num_cores


# ---------------------------------------------------------------------------
# Fused single-pass kernel: one (row_tile, HW) block per grid step.
# ---------------------------------------------------------------------------
def _adain_fused_kernel(x_ref, w_ref, b_ref, o_ref, *, eps, inv_hw):
    # x_ref/o_ref: (row_tile, HW); w_ref/b_ref: (row_tile, 1)
    x = x_ref[...].astype(jnp.float32)
    mean = jnp.sum(x, axis=1, keepdims=True) * inv_hw
    xc = x - mean
    var = jnp.sum(xc * xc, axis=1, keepdims=True) * inv_hw  # biased variance
    inv_std = jax.lax.rsqrt(var + eps)
    scale = w_ref[...].astype(jnp.float32) * inv_std
    o_ref[...] = (xc * scale + b_ref[...].astype(jnp.float32)).astype(o_ref.dtype)


# ---------------------------------------------------------------------------
# Column-tiled two-pass path (huge HW): stats sweep + apply sweep.
# ---------------------------------------------------------------------------
def _adain_stats_kernel(x_ref, w_ref, b_ref, scale_ref, shift_ref, s1_ref, s2_ref,
                        *, eps, inv_hw, hw, col_tile, mask_tail):
    j = pl.program_id(1)

    @pl.when(j == 0)
    def _():
        s1_ref[...] = jnp.zeros_like(s1_ref)
        s2_ref[...] = jnp.zeros_like(s2_ref)

    x = x_ref[...].astype(jnp.float32)
    if mask_tail:
        cols = j * col_tile + jax.lax.broadcasted_iota(jnp.int32, x.shape, 1)
        x = jnp.where(cols < hw, x, 0.0)
    s1_ref[...] += jnp.sum(x, axis=1, keepdims=True)
    s2_ref[...] += jnp.sum(x * x, axis=1, keepdims=True)

    @pl.when(j == pl.num_programs(1) - 1)
    def _():
        mean = s1_ref[...] * inv_hw
        # Single-pass variance across column blocks (clamped against
        # cancellation); only used on this huge-HW fallback path.
        var = jnp.maximum(s2_ref[...] * inv_hw - mean * mean, 0.0)
        inv_std = jax.lax.rsqrt(var + eps)
        scale = w_ref[...].astype(jnp.float32) * inv_std
        scale_ref[...] = scale
        shift_ref[...] = b_ref[...].astype(jnp.float32) - mean * scale


def _adain_apply_kernel(x_ref, scale_ref, shift_ref, o_ref):
    x = x_ref[...].astype(jnp.float32)
    o_ref[...] = (x * scale_ref[...] + shift_ref[...]).astype(o_ref.dtype)


# ---------------------------------------------------------------------------
# Wrapper
# ---------------------------------------------------------------------------
def adaptive_instance_norm_2d(x, weight, bias, *, eps=1e-5, force_two_pass=False):
    """x: (B, C, H, W); weight, bias: (B*C,).  Returns (B, C, H, W)."""
    B, C, H, W = x.shape
    BC = B * C
    HW = H * W
    assert weight.shape == (BC,) and bias.shape == (BC,), "weight/bias must be (B*C,)"

    itemsize = jnp.dtype(x.dtype).itemsize
    vmem_cap, num_cores = _tpu_vmem_and_cores()

    if vmem_cap <= (64 << 20):        # v7x-class: 64 MiB VMEM, 2 TCs
        vmem_budget = 56 << 20        # leave headroom below physical VMEM
        target_block = 6 << 20
    else:                             # v5e / v6e: 128 MiB VMEM, 1 TC
        vmem_budget = 96 << 20
        target_block = 8 << 20

    x2 = x.reshape(BC, HW)            # pure row-major collapse: no copy
    w2 = weight.reshape(BC, 1)
    b2 = bias.reshape(BC, 1)

    bc_ceil8 = max(8, _round_up(BC, 8))
    # Per-row VMEM cost of one fused step: double-buffered in + out blocks
    # plus ~3 f32-sized body temporaries.
    per_row = HW * (4 * itemsize + 12)
    use_two_pass = force_two_pass or (8 * per_row + (1 << 20)) > vmem_budget

    if not use_two_pass:
        # ---- fused single pass over HBM ------------------------------------
        budget_rows = max(8, (int((vmem_budget - (1 << 20)) // per_row) // 8) * 8)
        target_rows = max(8, (int(target_block // max(1, HW * itemsize)) // 8) * 8)
        rt = min(budget_rows, target_rows, bc_ceil8)
        if num_cores > 1 and bc_ceil8 >= num_cores * 8:
            # keep at least one row block per TensorCore on multi-TC chips
            rt = min(rt, max(8, ((bc_ceil8 // num_cores) // 8) * 8))
        row_tile = int(max(8, rt))
        grid = (pl.cdiv(BC, row_tile),)

        vmem_needed = row_tile * per_row + (1 << 20)
        vmem_limit = int(min(vmem_budget, max(32 << 20, vmem_needed)))

        cost = pl.CostEstimate(
            flops=5 * BC * HW,
            transcendentals=BC,
            bytes_accessed=2 * BC * HW * itemsize,
        )
        kernel = functools.partial(
            _adain_fused_kernel, eps=float(eps), inv_hw=1.0 / float(HW)
        )
        out2 = pl.pallas_call(
            kernel,
            out_shape=jax.ShapeDtypeStruct((BC, HW), x.dtype),
            grid_spec=pltpu.PrefetchScalarGridSpec(
                num_scalar_prefetch=0,
                grid=grid,
                in_specs=[
                    pl.BlockSpec((row_tile, HW), lambda i: (i, 0)),
                    pl.BlockSpec((row_tile, 1), lambda i: (i, 0)),
                    pl.BlockSpec((row_tile, 1), lambda i: (i, 0)),
                ],
                out_specs=pl.BlockSpec((row_tile, HW), lambda i: (i, 0)),
            ),
            compiler_params=pltpu.CompilerParams(
                dimension_semantics=("parallel",),
                vmem_limit_bytes=vmem_limit,
            ),
            cost_estimate=cost,
        )(x2, w2, b2)
        return out2.reshape(B, C, H, W)

    # ---- column-tiled two-pass path (huge HW) -------------------------------
    row_tile = int(min(bc_ceil8, 256))
    if num_cores > 1 and bc_ceil8 >= num_cores * 8:
        row_tile = min(row_tile, max(8, ((bc_ceil8 // num_cores) // 8) * 8))

    per_col = row_tile * (4 * itemsize + 12)
    budget_cols = max(128, (int((vmem_budget - (1 << 20)) // per_col) // 128) * 128)
    target_cols = max(128, (int(target_block // max(1, row_tile * itemsize)) // 128) * 128)
    col_tile = int(min(budget_cols, target_cols, _round_up(HW, 128)))
    grid = (pl.cdiv(BC, row_tile), pl.cdiv(HW, col_tile))
    mask_tail = (HW % col_tile) != 0

    vmem_needed = col_tile * per_col + (1 << 20)
    vmem_limit = int(min(vmem_budget, max(32 << 20, vmem_needed)))

    stats_kernel = functools.partial(
        _adain_stats_kernel, eps=float(eps), inv_hw=1.0 / float(HW),
        hw=HW, col_tile=col_tile, mask_tail=mask_tail,
    )
    scale, shift = pl.pallas_call(
        stats_kernel,
        out_shape=(jax.ShapeDtypeStruct((BC, 1), jnp.float32),
                   jax.ShapeDtypeStruct((BC, 1), jnp.float32)),
        grid_spec=pltpu.PrefetchScalarGridSpec(
            num_scalar_prefetch=0,
            grid=grid,
            in_specs=[
                pl.BlockSpec((row_tile, col_tile), lambda i, j: (i, j)),
                pl.BlockSpec((row_tile, 1), lambda i, j: (i, 0)),
                pl.BlockSpec((row_tile, 1), lambda i, j: (i, 0)),
            ],
            out_specs=[
                pl.BlockSpec((row_tile, 1), lambda i, j: (i, 0)),
                pl.BlockSpec((row_tile, 1), lambda i, j: (i, 0)),
            ],
            scratch_shapes=[pltpu.VMEM((row_tile, 1), jnp.float32),
                            pltpu.VMEM((row_tile, 1), jnp.float32)],
        ),
        compiler_params=pltpu.CompilerParams(
            dimension_semantics=("parallel", "arbitrary"),
            vmem_limit_bytes=vmem_limit,
        ),
    )(x2, w2, b2)

    out2 = pl.pallas_call(
        _adain_apply_kernel,
        out_shape=jax.ShapeDtypeStruct((BC, HW), x.dtype),
        grid_spec=pltpu.PrefetchScalarGridSpec(
            num_scalar_prefetch=0,
            grid=grid,
            in_specs=[
                pl.BlockSpec((row_tile, col_tile), lambda i, j: (i, j)),
                pl.BlockSpec((row_tile, 1), lambda i, j: (i, 0)),
                pl.BlockSpec((row_tile, 1), lambda i, j: (i, 0)),
            ],
            out_specs=pl.BlockSpec((row_tile, col_tile), lambda i, j: (i, j)),
        ),
        compiler_params=pltpu.CompilerParams(
            dimension_semantics=("parallel", "parallel"),
            vmem_limit_bytes=vmem_limit,
        ),
    )(x2, scale, shift)
    return out2.reshape(B, C, H, W)


def _reference_adain(x, weight, bias, eps=1e-5):
    """Pure-JAX reference matching F.batch_norm(training=True) on (1, B*C, H, W)."""
    B, C, H, W = x.shape
    xr = x.reshape(B * C, H * W).astype(jnp.float32)
    mean = xr.mean(axis=1, keepdims=True)
    var = ((xr - mean) ** 2).mean(axis=1, keepdims=True)  # biased variance
    out = (xr - mean) / jnp.sqrt(var + eps)
    out = out * weight[:, None] + bias[:, None]
    return out.reshape(B, C, H, W).astype(x.dtype)


if __name__ == "__main__":
    key = jax.random.PRNGKey(0)

    # --- main shape: exercises the fused single-pass path --------------------
    B, C, H, W = 2, 4, 16, 16
    kx, kw, kb, kx2, kw2, kb2 = jax.random.split(key, 6)
    x = jax.random.normal(kx, (B, C, H, W), dtype=jnp.float32)
    # AdaIN weight/bias are assigned externally (e.g. from a style MLP), shape (B*C,).
    weight = jax.random.normal(kw, (B * C,), dtype=jnp.float32) * 0.5 + 1.0
    bias = jax.random.normal(kb, (B * C,), dtype=jnp.float32) * 0.1

    ref = _reference_adain(x, weight, bias, eps=1e-5)
    out = jax.block_until_ready(adaptive_instance_norm_2d(x, weight, bias, eps=1e-5))
    assert out.shape == (B, C, H, W)
    assert jnp.allclose(out, ref, atol=1e-4, rtol=1e-4), "fused path mismatch"

    # Also exercise the column-tiled two-pass (huge-HW fallback) path.
    out_tp = jax.block_until_ready(
        adaptive_instance_norm_2d(x, weight, bias, eps=1e-5, force_two_pass=True))
    assert jnp.allclose(out_tp, ref, atol=1e-4, rtol=1e-4), "two-pass path mismatch"

    # --- ragged shape: BC % 8 != 0 and HW % 128 != 0 (Pallas edge masking) ----
    B2, C2, H2, W2 = 2, 5, 15, 15
    x2 = jax.random.normal(kx2, (B2, C2, H2, W2), dtype=jnp.float32)
    w2 = jax.random.normal(kw2, (B2 * C2,), dtype=jnp.float32) * 0.5 + 1.0
    b2 = jax.random.normal(kb2, (B2 * C2,), dtype=jnp.float32) * 0.1
    ref2 = _reference_adain(x2, w2, b2, eps=1e-5)
    o2 = jax.block_until_ready(adaptive_instance_norm_2d(x2, w2, b2, eps=1e-5))
    assert jnp.allclose(o2, ref2, atol=1e-4, rtol=1e-4), "ragged fused mismatch"
    o2_tp = jax.block_until_ready(
        adaptive_instance_norm_2d(x2, w2, b2, eps=1e-5, force_two_pass=True))
    assert jnp.allclose(o2_tp, ref2, atol=1e-4, rtol=1e-4), "ragged two-pass mismatch"

    print("KERNEL_OK")
</pallas_src>

<mosaic_0001>
module attributes {stable_mosaic.version = 11 : i64} {
  func.func @_adain_fused_kernel(%arg0: i32, %arg1: memref<8x256xf32, #tpu.memory_space<vmem>>, %arg2: memref<8x1xf32, #tpu.memory_space<vmem>>, %arg3: memref<8x1xf32, #tpu.memory_space<vmem>>, %arg4: memref<8x256xf32, #tpu.memory_space<vmem>>) attributes {dimension_semantics = [#tpu.dimension_semantics<parallel>], iteration_bounds = array<i64: 1>, scalar_prefetch = 0 : i64, scratch_operands = 0 : i64, tpu.core_type = #tpu.core_type<tc>, window_params = [{transform_indices = @transform_0, window_bounds = array<i64: 8, 256>}, {transform_indices = @transform_1, window_bounds = array<i64: 8, 1>}, {transform_indices = @transform_2, window_bounds = array<i64: 8, 1>}, {transform_indices = @transform_3, window_bounds = array<i64: 8, 256>}]} {
    %c0 = arith.constant 0 : index
    %c0_0 = arith.constant 0 : index
    %0 = vector.load %arg1[%c0, %c0_0] : memref<8x256xf32, #tpu.memory_space<vmem>>, vector<8x256xf32>
    %cst = arith.constant dense<0.000000e+00> : vector<8xf32>
    %1 = vector.multi_reduction <add>, %0, %cst [1] : vector<8x256xf32> to vector<8xf32>
    %2 = vector.shape_cast %1 : vector<8xf32> to vector<8x1xf32>
    %cst_1 = arith.constant 3.906250e-03 : f32
    %3 = vector.broadcast %cst_1 : f32 to vector<8x1xf32>
    %4 = arith.mulf %2, %3 : vector<8x1xf32>
    %5 = vector.broadcast %4 : vector<8x1xf32> to vector<8x256xf32>
    %6 = arith.subf %0, %5 : vector<8x256xf32>
    %7 = arith.mulf %6, %6 : vector<8x256xf32>
    %cst_2 = arith.constant dense<0.000000e+00> : vector<8xf32>
    %8 = vector.multi_reduction <add>, %7, %cst_2 [1] : vector<8x256xf32> to vector<8xf32>
    %9 = vector.shape_cast %8 : vector<8xf32> to vector<8x1xf32>
    %cst_3 = arith.constant 3.906250e-03 : f32
    %10 = vector.broadcast %cst_3 : f32 to vector<8x1xf32>
    %11 = arith.mulf %9, %10 : vector<8x1xf32>
    %cst_4 = arith.constant 9.99999974E-6 : f32
    %12 = vector.broadcast %cst_4 : f32 to vector<8x1xf32>
    %13 = arith.addf %11, %12 : vector<8x1xf32>
    %14 = math.rsqrt %13 : vector<8x1xf32>
    %c0_5 = arith.constant 0 : index
    %c0_6 = arith.constant 0 : index
    %15 = vector.load %arg2[%c0_5, %c0_6] : memref<8x1xf32, #tpu.memory_space<vmem>>, vector<8x1xf32>
    %16 = arith.mulf %15, %14 : vector<8x1xf32>
    %17 = vector.broadcast %16 : vector<8x1xf32> to vector<8x256xf32>
    %18 = arith.mulf %6, %17 : vector<8x256xf32>
    %c0_7 = arith.constant 0 : index
    %c0_8 = arith.constant 0 : index
    %19 = vector.load %arg3[%c0_7, %c0_8] : memref<8x1xf32, #tpu.memory_space<vmem>>, vector<8x1xf32>
    %20 = vector.broadcast %19 : vector<8x1xf32> to vector<8x256xf32>
    %21 = arith.addf %18, %20 : vector<8x256xf32>
    %c0_9 = arith.constant 0 : index
    %c0_10 = arith.constant 0 : index
    %22 = vector.load %arg4[%c0_9, %c0_10] : memref<8x256xf32, #tpu.memory_space<vmem>>, vector<8x256xf32>
    tpu.vector_store %arg4[%c0_9, %c0_10], %21 {strides = array<i32>} : memref<8x256xf32, #tpu.memory_space<vmem>>, vector<8x256xf32>,
    return
  }
  func.func @transform_0(%arg0: i32) -> (i32, i32) {
    %c0_i32 = arith.constant 0 : i32
    %c0_i32_0 = arith.constant 0 : i32
    return %arg0, %c0_i32 : i32, i32
  }
  func.func @transform_1(%arg0: i32) -> (i32, i32) {
    %c0_i32 = arith.constant 0 : i32
    %c0_i32_0 = arith.constant 0 : i32
    return %arg0, %c0_i32 : i32, i32
  }
  func.func @transform_2(%arg0: i32) -> (i32, i32) {
    %c0_i32 = arith.constant 0 : i32
    %c0_i32_0 = arith.constant 0 : i32
    return %arg0, %c0_i32 : i32, i32
  }
  func.func @transform_3(%arg0: i32) -> (i32, i32) {
    %c0_i32 = arith.constant 0 : i32
    %c0_i32_0 = arith.constant 0 : i32
    return %arg0, %c0_i32 : i32, i32
  }
}

</mosaic_0001>

<bundles_post_ra>
// kernel: tpu_custom_call.1
= control target key start
LH: loop header
LB: loop body
LE: loop exit
PB: predicated region body
PF: predicated region fallthrough
CT: control target
= control target key end

     0   :  { %s129_s0 = inlined_call_operand.vmem [shape: f32[8,256], index: 0, kind: input, shape index: {}]   ;;  %s130_s1 = inlined_call_operand.vmem [shape: f32[8,1], index: 1, kind: input, shape index: {}]   ;;  %s131_s2 = inlined_call_operand.vmem [shape: f32[8,1], index: 2, kind: input, shape index: {}]   ;;  %s132_s3 = inlined_call_operand.hbm [shape: f32[8,256], index: 3, kind: output, shape index: {}]  }
   0x1   :  { %v15_v0 = vld [vmem:[%s129_s0] sm:$0xff]  ;;  %v16_v1 = vld [vmem:[%s129_s0 + $0x8] sm:$0xff] }
   0x2   :  { %8 = vsyncpa [#allocation3], 0  ;;  %v17_v2 = vadd.f32 %v16_v1, %v15_v0  ;;  %v92_v10 = vmov 0   ;;  %v31_v14 = vld [vmem:[%s130_s1] sm:$0xff]  ;;  %s93_s19 = smov [#allocation2]  }
   0x3   :  { %66 = vset.pattern.permute.xlu1 %v92_v10  ;;  %67 = vset.pattern.permute.xlu0 %v92_v10  ;;  %v40_v17 = vld [vmem:[%s131_s2] sm:$0xff]  ;;  %s56_s20 = sshll.u32 %s93_s19, 4  ;;  %s57_s20 = int_to_ptr.vmem [resolvable:$true] %s56_s20 }
   0x4   :  { %18 = vadd.xlane.f32.xlu0 %v17_v2  ;;  %s70_s1 = scalar_lea.vmem %s57_s20, 256  ;;  %p75_p1 = scmp.lt.s32.totalorder %s57_s20, %s57_s20 }
   0x5   :  { %p71_p0 = scmp.ne.s32.totalorder %s57_s20, %s70_s1  ;;  %p76_p2 = scmp.lt.s32.totalorder %s70_s1, %s70_s1 }
   0x7   :  { %p77_p3 = por %p76_p2, %p75_p1 }
   0x9   :  { %p78_p4 = pnand %p77_p3, %p71_p0 }
  0x8d   :  { %v19_v3 = vpop.xlane.xlu0 %18 }
  0x8e   :  { %v20_v4 = vmul.f32 0.00390625, %v19_v3 }
  0x90   :  { %v21_v5 = vsub.f32 %v15_v0, %v20_v4  ;;  %v22_v6 = vsub.f32 %v16_v1, %v20_v4 }
  0x92   :  { %v23_v7 = vmul.f32 %v21_v5, %v21_v5  ;;  %v24_v8 = vmul.f32 %v22_v6, %v22_v6 }
  0x94   :  { %v25_v9 = vadd.f32 %v24_v8, %v23_v7 }
  0x96   :  { %26 = vadd.xlane.f32.xlu0 %v25_v9 }
 0x11f   :  { %v27_v11 = vpop.xlane.xlu0 %26 }
 0x120   :  { %v28_v12 = vmul.f32 0.00390625, %v27_v11 }
 0x122   :  { %v29_v13 = vadd.f32 1e-05, %v28_v12 }
 0x124   :  { %68 = vrsqrt.f32 %v29_v13 }
 0x131   :  { %v69_v15 = vpop.eup %68 }
 0x132   :  { %v32_v16 = vmul.f32 %v69_v15, %v31_v14 }
 0x134   :  { %35 = vperm.xlu1 %66, %v32_v16  }
 0x138   :  { %43 = vperm.xlu1 %66, %v40_v17  }
 0x1af   :  { %v36_v18 = vpop.permute.xlu1 %35 }
 0x1b0   :  { %v38_v19 = vmul.f32 %v36_v18, %v21_v5  ;;  %v39_v20 = vmul.f32 %v36_v18, %v22_v6 }
 0x1b3   :  { %v44_v21 = vpop.permute.xlu1 %43 }
 0x1b4   :  { %v46_v22 = vadd.f32 %v44_v21, %v38_v19  ;;  %v47_v23 = vadd.f32 %v44_v21, %v39_v20 }
 0x1b6   :  { %48 = vst [vmem:[#allocation2] sm:$0xff] %v46_v22  ;;  %49 = vst [vmem:[#allocation2 + $0x8] sm:$0xff] %v47_v23 }
 0x1b7   :  { %81 = shalt.err (!%p78_p4)
}
 0x1b8   :  { %59 = dma.vmem_to_hbm [thread:$0]  %s57_s20, 256, %s132_s3, [#allocation3]  }
 0x1b9   :  { %90 = dma.done.wait [#allocation3], 256  }
 0x1ba   :  { %91 = vsyncadd [#allocation3], 4294967040 }
 0x1bb   :  { %63 = vsyncpa [#allocation3], 1 }

</bundles_post_ra>
